<compile_context>
chip_gen: v5e
topology: v5e:2x2
jax: 0.10.0
libtpu: 0.0.40
codegen_flags: <defaults>
</compile_context>

<pallas_src>
import functools

import jax
import jax.numpy as jnp
from jax.experimental import pallas as pl
from jax.experimental.pallas import tpu as pltpu


_VMEM = pl.BlockSpec(memory_space=pltpu.MemorySpace.VMEM)


# ----------------------------- fused Pallas kernel ------------------------------


def _gcn_net_kernel(ids_ref, emb_ref, a_ref, w_ref, b_ref,
                    w1_ref, b1_ref, w2_ref, b2_ref, w3_ref, b3_ref,
                    o_ref, *, n_layers, num_atom_type, residual):
    """Fused GCNNet forward: embedding -> L GCN layers -> mean readout -> MLP."""
    n = ids_ref.shape[0]

    # --- Embedding lookup as one-hot matmul (no dynamic gather needed) ---
    ids = ids_ref[...]                                                  # [N, 1] int32
    iota = jax.lax.broadcasted_iota(jnp.int32, (n, num_atom_type), 1)   # [N, A]
    one_hot = (iota == ids).astype(jnp.float32)                         # [N, A]
    h = jnp.dot(one_hot, emb_ref[...], preferred_element_type=jnp.float32)  # [N, D]
    # in_feat_dropout -> identity at inference.

    a = a_ref[...]                                                      # [N, N]

    # --- GCN layers (BN folded into W/b; dropout = identity at inference) ---
    for l in range(n_layers):                                           # L is static; unrolled
        hw = jnp.dot(h, w_ref[l], preferred_element_type=jnp.float32)   # [N, Dout]
        agg = jnp.dot(a, hw, preferred_element_type=jnp.float32)        # [N, Dout]
        x = jnp.maximum(agg + b_ref[l], 0.0)                            # ReLU(BN-folded conv)
        if residual:                                                    # in_dim == out_dim here
            x = x + h
        h = x

    # --- readout='mean' + MLPReadout (L=2) ---
    hg = jnp.mean(h, axis=0, keepdims=True)                             # [1, Dout]
    y = jnp.dot(hg, w1_ref[...], preferred_element_type=jnp.float32) + b1_ref[...]
    y = jnp.maximum(y, 0.0)
    y = jnp.dot(y, w2_ref[...], preferred_element_type=jnp.float32) + b2_ref[...]
    y = jnp.maximum(y, 0.0)
    o_ref[...] = jnp.dot(y, w3_ref[...], preferred_element_type=jnp.float32) + b3_ref[...]


# ------------------------------ model wrapper ------------------------------


def init_params(key, num_atom_type, hidden_dim, out_dim, n_layers):
    keys = jax.random.split(key, 3 + 2 * n_layers + 6)
    ki = iter(keys)
    params = {}
    # nn.Embedding default init: N(0, 1)
    params["emb"] = jax.random.normal(next(ki), (num_atom_type, hidden_dim),
                                      jnp.float32)
    dims = [hidden_dim] * (n_layers - 1) + [out_dim]
    # Stacking requires uniform layer shapes (true for hidden_dim == out_dim).
    assert all(d == dims[0] for d in dims) and hidden_dim == dims[0], \
        "weight stacking assumes hidden_dim == out_dim"
    eps = 1e-5
    w_stack, b_stack = [], []
    d_in = hidden_dim
    for d_out in dims:
        w = jax.random.normal(next(ki), (d_in, d_out), jnp.float32) * (1.0 / jnp.sqrt(d_in))
        b = jax.random.normal(next(ki), (1, d_out), jnp.float32) * 0.01
        # BatchNorm1d eval-mode affine: gamma=1, beta=0, mean=0, var=1  -> fold into W/b.
        gamma = jnp.ones((1, d_out), jnp.float32)
        beta = jnp.zeros((1, d_out), jnp.float32)
        running_mean = jnp.zeros((1, d_out), jnp.float32)
        running_var = jnp.ones((1, d_out), jnp.float32)
        scale = gamma / jnp.sqrt(running_var + eps)
        shift = beta - running_mean * scale
        w_stack.append(w * scale)           # column scale commutes through A_norm @ (.)
        b_stack.append(b * scale + shift)
        d_in = d_out
    params["w_stack"] = jnp.stack(w_stack, axis=0)   # [L, D, D]
    params["b_stack"] = jnp.stack(b_stack, axis=0)   # [L, 1, D]
    params["residual"] = hidden_dim == out_dim       # GCNLayer only adds residual if dims match
    # MLPReadout(out_dim, 1, L=2): out_dim -> out_dim//2 -> out_dim//4 -> 1
    d0, d1, d2 = out_dim, out_dim // 2, out_dim // 4
    params["mlp_w1"] = jax.random.normal(next(ki), (d0, d1), jnp.float32) * (1.0 / jnp.sqrt(d0))
    params["mlp_b1"] = jax.random.normal(next(ki), (1, d1), jnp.float32) * 0.01
    params["mlp_w2"] = jax.random.normal(next(ki), (d1, d2), jnp.float32) * (1.0 / jnp.sqrt(d1))
    params["mlp_b2"] = jax.random.normal(next(ki), (1, d2), jnp.float32) * 0.01
    params["mlp_w3"] = jax.random.normal(next(ki), (d2, 1), jnp.float32) * (1.0 / jnp.sqrt(d2))
    params["mlp_b3"] = jax.random.normal(next(ki), (1, 1), jnp.float32) * 0.01
    return params


def build_norm_adjacency(src, dst, n_nodes):
    """Dense A_norm for DGL GraphConv norm='both' (no self loops added)."""
    adj = jnp.zeros((n_nodes, n_nodes), jnp.float32)
    # message j->i means A[i, j] = 1
    adj = adj.at[dst, src].add(1.0)
    out_deg = jnp.maximum(jnp.sum(adj, axis=0), 1.0)   # out-degree of source j (clamp >= 1)
    in_deg = jnp.maximum(jnp.sum(adj, axis=1), 1.0)    # in-degree of dest i (clamp >= 1)
    return adj * (in_deg[:, None] ** -0.5) * (out_deg[None, :] ** -0.5)


@functools.partial(jax.jit, static_argnames=("n_layers", "num_atom_type", "residual"))
def gcn_net_forward(params, a_norm, atom_type, *, n_layers, num_atom_type, residual):
    n = atom_type.shape[0]
    ids = atom_type.astype(jnp.int32).reshape(n, 1)
    kernel = functools.partial(_gcn_net_kernel,
                               n_layers=n_layers,
                               num_atom_type=num_atom_type,
                               residual=residual)
    return pl.pallas_call(
        kernel,
        out_shape=jax.ShapeDtypeStruct((1, 1), jnp.float32),
        in_specs=[_VMEM] * 11,
        out_specs=_VMEM,
    )(ids, params["emb"], a_norm, params["w_stack"], params["b_stack"],
      params["mlp_w1"], params["mlp_b1"],
      params["mlp_w2"], params["mlp_b2"],
      params["mlp_w3"], params["mlp_b3"])


# ----------------------------------- main -----------------------------------


if __name__ == "__main__":
    # net_params (small, consistent with molecules GCN config)
    num_atom_type = 28
    num_bond_type = 4
    hidden_dim = 32
    out_dim = 32
    n_layers = 4           # 'L'
    n_nodes = 16
    n_edges = 40

    key = jax.random.PRNGKey(0)
    k_param, k_h, k_src, k_dst, k_e = jax.random.split(key, 5)

    params = init_params(k_param, num_atom_type, hidden_dim, out_dim, n_layers)

    # graph: random directed edges over 16 nodes
    atom_type = jax.random.randint(k_h, (n_nodes,), 0, num_atom_type)           # h (node ints)
    src = jax.random.randint(k_src, (n_edges,), 0, n_nodes)
    dst = jax.random.randint(k_dst, (n_edges,), 0, n_nodes)
    bond_type = jax.random.randint(k_e, (n_edges,), 0, num_bond_type)           # e (unused by GCN)
    a_norm = build_norm_adjacency(src, dst, n_nodes)

    # TODO(synk): batch multiple molecules (block-diagonal A_norm, M a multiple of
    # 128/256, bf16 matmul inputs) to raise MXU utilization; single-graph inference
    # at N=16, D=32 is inherently launch/DMA-bound.
    score = gcn_net_forward(params, a_norm, atom_type,
                            n_layers=n_layers,
                            num_atom_type=num_atom_type,
                            residual=params["residual"])
    jax.block_until_ready(score)
    assert score.shape == (1, 1)
    print("KERNEL_OK")
</pallas_src>

<mosaic_0001>
module attributes {stable_mosaic.version = 11 : i64} {
  func.func @_gcn_net_kernel(%arg0: memref<16x1xi32, #tpu.memory_space<vmem>>, %arg1: memref<28x32xf32, #tpu.memory_space<vmem>>, %arg2: memref<16x16xf32, #tpu.memory_space<vmem>>, %arg3: memref<4x32x32xf32, #tpu.memory_space<vmem>>, %arg4: memref<4x1x32xf32, #tpu.memory_space<vmem>>, %arg5: memref<32x16xf32, #tpu.memory_space<vmem>>, %arg6: memref<1x16xf32, #tpu.memory_space<vmem>>, %arg7: memref<16x8xf32, #tpu.memory_space<vmem>>, %arg8: memref<1x8xf32, #tpu.memory_space<vmem>>, %arg9: memref<8x1xf32, #tpu.memory_space<vmem>>, %arg10: memref<1x1xf32, #tpu.memory_space<vmem>>, %arg11: memref<1x1xf32, #tpu.memory_space<vmem>>) attributes {dimension_semantics = [], scalar_prefetch = 0 : i64, scratch_operands = 0 : i64, tpu.core_type = #tpu.core_type<tc>} {
    %c0 = arith.constant 0 : index
    %c0_0 = arith.constant 0 : index
    %0 = vector.load %arg0[%c0, %c0_0] : memref<16x1xi32, #tpu.memory_space<vmem>>, vector<16x1xi32>
    %1 = tpu.iota {dimensions = array<i32: 1>} : vector<16x28xi32>
    %2 = vector.broadcast %0 : vector<16x1xi32> to vector<16x28xi32>
    %3 = arith.cmpi eq, %1, %2 : vector<16x28xi32>
    %4 = arith.extui %3 : vector<16x28xi1> to vector<16x28xi32>
    %5 = arith.sitofp %4 : vector<16x28xi32> to vector<16x28xf32>
    %c0_1 = arith.constant 0 : index
    %c0_2 = arith.constant 0 : index
    %6 = vector.load %arg1[%c0_1, %c0_2] : memref<28x32xf32, #tpu.memory_space<vmem>>, vector<28x32xf32>
    %cst = arith.constant dense<0.000000e+00> : vector<16x32xf32>
    %7 = tpu.matmul %5, %6, %cst {dimension_numbers = #tpu.dot_dimension_numbers<[1], [0], [0], [1], [0, 0, 1, 1], [], []>} : vector<16x28xf32>, vector<28x32xf32>, vector<16x32xf32> -> vector<16x32xf32>
    %c0_3 = arith.constant 0 : index
    %c0_4 = arith.constant 0 : index
    %8 = vector.load %arg2[%c0_3, %c0_4] : memref<16x16xf32, #tpu.memory_space<vmem>>, vector<16x16xf32>
    %c0_5 = arith.constant 0 : index
    %c0_6 = arith.constant 0 : index
    %c0_7 = arith.constant 0 : index
    %9 = vector.load %arg3[%c0_5, %c0_6, %c0_7] : memref<4x32x32xf32, #tpu.memory_space<vmem>>, vector<1x32x32xf32>
    %10 = vector.shape_cast %9 : vector<1x32x32xf32> to vector<32x32xf32>
    %cst_8 = arith.constant dense<0.000000e+00> : vector<16x32xf32>
    %11 = tpu.matmul %7, %10, %cst_8 {dimension_numbers = #tpu.dot_dimension_numbers<[1], [0], [0], [1], [0, 0, 1, 1], [], []>} : vector<16x32xf32>, vector<32x32xf32>, vector<16x32xf32> -> vector<16x32xf32>
    %cst_9 = arith.constant dense<0.000000e+00> : vector<16x32xf32>
    %12 = tpu.matmul %8, %11, %cst_9 {dimension_numbers = #tpu.dot_dimension_numbers<[1], [0], [0], [1], [0, 0, 1, 1], [], []>} : vector<16x16xf32>, vector<16x32xf32>, vector<16x32xf32> -> vector<16x32xf32>
    %c0_10 = arith.constant 0 : index
    %c0_11 = arith.constant 0 : index
    %c0_12 = arith.constant 0 : index
    %13 = vector.load %arg4[%c0_10, %c0_11, %c0_12] : memref<4x1x32xf32, #tpu.memory_space<vmem>>, vector<1x1x32xf32>
    %14 = vector.shape_cast %13 : vector<1x1x32xf32> to vector<1x32xf32>
    %15 = vector.broadcast %14 : vector<1x32xf32> to vector<16x32xf32>
    %16 = arith.addf %12, %15 : vector<16x32xf32>
    %cst_13 = arith.constant 0.000000e+00 : f32
    %17 = vector.broadcast %cst_13 : f32 to vector<16x32xf32>
    %18 = arith.maximumf %16, %17 : vector<16x32xf32>
    %19 = arith.addf %18, %7 : vector<16x32xf32>
    %c1 = arith.constant 1 : index
    %c0_14 = arith.constant 0 : index
    %c0_15 = arith.constant 0 : index
    %20 = vector.load %arg3[%c1, %c0_14, %c0_15] : memref<4x32x32xf32, #tpu.memory_space<vmem>>, vector<1x32x32xf32>
    %21 = vector.shape_cast %20 : vector<1x32x32xf32> to vector<32x32xf32>
    %cst_16 = arith.constant dense<0.000000e+00> : vector<16x32xf32>
    %22 = tpu.matmul %19, %21, %cst_16 {dimension_numbers = #tpu.dot_dimension_numbers<[1], [0], [0], [1], [0, 0, 1, 1], [], []>} : vector<16x32xf32>, vector<32x32xf32>, vector<16x32xf32> -> vector<16x32xf32>
    %cst_17 = arith.constant dense<0.000000e+00> : vector<16x32xf32>
    %23 = tpu.matmul %8, %22, %cst_17 {dimension_numbers = #tpu.dot_dimension_numbers<[1], [0], [0], [1], [0, 0, 1, 1], [], []>} : vector<16x16xf32>, vector<16x32xf32>, vector<16x32xf32> -> vector<16x32xf32>
    %c1_18 = arith.constant 1 : index
    %c0_19 = arith.constant 0 : index
    %c0_20 = arith.constant 0 : index
    %24 = vector.load %arg4[%c1_18, %c0_19, %c0_20] : memref<4x1x32xf32, #tpu.memory_space<vmem>>, vector<1x1x32xf32>
    %25 = vector.shape_cast %24 : vector<1x1x32xf32> to vector<1x32xf32>
    %26 = vector.broadcast %25 : vector<1x32xf32> to vector<16x32xf32>
    %27 = arith.addf %23, %26 : vector<16x32xf32>
    %cst_21 = arith.constant 0.000000e+00 : f32
    %28 = vector.broadcast %cst_21 : f32 to vector<16x32xf32>
    %29 = arith.maximumf %27, %28 : vector<16x32xf32>
    %30 = arith.addf %29, %19 : vector<16x32xf32>
    %c2 = arith.constant 2 : index
    %c0_22 = arith.constant 0 : index
    %c0_23 = arith.constant 0 : index
    %31 = vector.load %arg3[%c2, %c0_22, %c0_23] : memref<4x32x32xf32, #tpu.memory_space<vmem>>, vector<1x32x32xf32>
    %32 = vector.shape_cast %31 : vector<1x32x32xf32> to vector<32x32xf32>
    %cst_24 = arith.constant dense<0.000000e+00> : vector<16x32xf32>
    %33 = tpu.matmul %30, %32, %cst_24 {dimension_numbers = #tpu.dot_dimension_numbers<[1], [0], [0], [1], [0, 0, 1, 1], [], []>} : vector<16x32xf32>, vector<32x32xf32>, vector<16x32xf32> -> vector<16x32xf32>
    %cst_25 = arith.constant dense<0.000000e+00> : vector<16x32xf32>
    %34 = tpu.matmul %8, %33, %cst_25 {dimension_numbers = #tpu.dot_dimension_numbers<[1], [0], [0], [1], [0, 0, 1, 1], [], []>} : vector<16x16xf32>, vector<16x32xf32>, vector<16x32xf32> -> vector<16x32xf32>
    %c2_26 = arith.constant 2 : index
    %c0_27 = arith.constant 0 : index
    %c0_28 = arith.constant 0 : index
    %35 = vector.load %arg4[%c2_26, %c0_27, %c0_28] : memref<4x1x32xf32, #tpu.memory_space<vmem>>, vector<1x1x32xf32>
    %36 = vector.shape_cast %35 : vector<1x1x32xf32> to vector<1x32xf32>
    %37 = vector.broadcast %36 : vector<1x32xf32> to vector<16x32xf32>
    %38 = arith.addf %34, %37 : vector<16x32xf32>
    %cst_29 = arith.constant 0.000000e+00 : f32
    %39 = vector.broadcast %cst_29 : f32 to vector<16x32xf32>
    %40 = arith.maximumf %38, %39 : vector<16x32xf32>
    %41 = arith.addf %40, %30 : vector<16x32xf32>
    %c3 = arith.constant 3 : index
    %c0_30 = arith.constant 0 : index
    %c0_31 = arith.constant 0 : index
    %42 = vector.load %arg3[%c3, %c0_30, %c0_31] : memref<4x32x32xf32, #tpu.memory_space<vmem>>, vector<1x32x32xf32>
    %43 = vector.shape_cast %42 : vector<1x32x32xf32> to vector<32x32xf32>
    %cst_32 = arith.constant dense<0.000000e+00> : vector<16x32xf32>
    %44 = tpu.matmul %41, %43, %cst_32 {dimension_numbers = #tpu.dot_dimension_numbers<[1], [0], [0], [1], [0, 0, 1, 1], [], []>} : vector<16x32xf32>, vector<32x32xf32>, vector<16x32xf32> -> vector<16x32xf32>
    %cst_33 = arith.constant dense<0.000000e+00> : vector<16x32xf32>
    %45 = tpu.matmul %8, %44, %cst_33 {dimension_numbers = #tpu.dot_dimension_numbers<[1], [0], [0], [1], [0, 0, 1, 1], [], []>} : vector<16x16xf32>, vector<16x32xf32>, vector<16x32xf32> -> vector<16x32xf32>
    %c3_34 = arith.constant 3 : index
    %c0_35 = arith.constant 0 : index
    %c0_36 = arith.constant 0 : index
    %46 = vector.load %arg4[%c3_34, %c0_35, %c0_36] : memref<4x1x32xf32, #tpu.memory_space<vmem>>, vector<1x1x32xf32>
    %47 = vector.shape_cast %46 : vector<1x1x32xf32> to vector<1x32xf32>
    %48 = vector.broadcast %47 : vector<1x32xf32> to vector<16x32xf32>
    %49 = arith.addf %45, %48 : vector<16x32xf32>
    %cst_37 = arith.constant 0.000000e+00 : f32
    %50 = vector.broadcast %cst_37 : f32 to vector<16x32xf32>
    %51 = arith.maximumf %49, %50 : vector<16x32xf32>
    %52 = arith.addf %51, %41 : vector<16x32xf32>
    %cst_38 = arith.constant dense<0.000000e+00> : vector<32xf32>
    %53 = vector.multi_reduction <add>, %52, %cst_38 [0] : vector<16x32xf32> to vector<32xf32>
    %54 = vector.shape_cast %53 : vector<32xf32> to vector<1x32xf32>
    %cst_39 = arith.constant 1.600000e+01 : f32
    %55 = vector.broadcast %cst_39 : f32 to vector<1x32xf32>
    %56 = arith.divf %54, %55 : vector<1x32xf32>
    %c0_40 = arith.constant 0 : index
    %c0_41 = arith.constant 0 : index
    %57 = vector.load %arg5[%c0_40, %c0_41] : memref<32x16xf32, #tpu.memory_space<vmem>>, vector<32x16xf32>
    %cst_42 = arith.constant dense<0.000000e+00> : vector<1x16xf32>
    %58 = tpu.matmul %56, %57, %cst_42 {dimension_numbers = #tpu.dot_dimension_numbers<[1], [0], [0], [1], [0, 0, 1, 1], [], []>} : vector<1x32xf32>, vector<32x16xf32>, vector<1x16xf32> -> vector<1x16xf32>
    %c0_43 = arith.constant 0 : index
    %c0_44 = arith.constant 0 : index
    %59 = vector.load %arg6[%c0_43, %c0_44] : memref<1x16xf32, #tpu.memory_space<vmem>>, vector<1x16xf32>
    %60 = arith.addf %58, %59 : vector<1x16xf32>
    %cst_45 = arith.constant 0.000000e+00 : f32
    %61 = vector.broadcast %cst_45 : f32 to vector<1x16xf32>
    %62 = arith.maximumf %60, %61 : vector<1x16xf32>
    %c0_46 = arith.constant 0 : index
    %c0_47 = arith.constant 0 : index
    %63 = vector.load %arg7[%c0_46, %c0_47] : memref<16x8xf32, #tpu.memory_space<vmem>>, vector<16x8xf32>
    %cst_48 = arith.constant dense<0.000000e+00> : vector<1x8xf32>
    %64 = tpu.matmul %62, %63, %cst_48 {dimension_numbers = #tpu.dot_dimension_numbers<[1], [0], [0], [1], [0, 0, 1, 1], [], []>} : vector<1x16xf32>, vector<16x8xf32>, vector<1x8xf32> -> vector<1x8xf32>
    %c0_49 = arith.constant 0 : index
    %c0_50 = arith.constant 0 : index
    %65 = vector.load %arg8[%c0_49, %c0_50] : memref<1x8xf32, #tpu.memory_space<vmem>>, vector<1x8xf32>
    %66 = arith.addf %64, %65 : vector<1x8xf32>
    %cst_51 = arith.constant 0.000000e+00 : f32
    %67 = vector.broadcast %cst_51 : f32 to vector<1x8xf32>
    %68 = arith.maximumf %66, %67 : vector<1x8xf32>
    %c0_52 = arith.constant 0 : index
    %c0_53 = arith.constant 0 : index
    %69 = vector.load %arg9[%c0_52, %c0_53] : memref<8x1xf32, #tpu.memory_space<vmem>>, vector<8x1xf32>
    %cst_54 = arith.constant dense<0.000000e+00> : vector<1x1xf32>
    %70 = tpu.matmul %68, %69, %cst_54 {dimension_numbers = #tpu.dot_dimension_numbers<[1], [0], [0], [1], [0, 0, 1, 1], [], []>} : vector<1x8xf32>, vector<8x1xf32>, vector<1x1xf32> -> vector<1x1xf32>
    %c0_55 = arith.constant 0 : index
    %c0_56 = arith.constant 0 : index
    %71 = vector.load %arg10[%c0_55, %c0_56] : memref<1x1xf32, #tpu.memory_space<vmem>>, vector<1x1xf32>
    %72 = arith.addf %70, %71 : vector<1x1xf32>
    %c0_57 = arith.constant 0 : index
    %c0_58 = arith.constant 0 : index
    %73 = vector.load %arg11[%c0_57, %c0_58] : memref<1x1xf32, #tpu.memory_space<vmem>>, vector<1x1xf32>
    tpu.vector_store %arg11[%c0_57, %c0_58], %72 {strides = array<i32>} : memref<1x1xf32, #tpu.memory_space<vmem>>, vector<1x1xf32>,
    return
  }
}

</mosaic_0001>

<bundles_post_ra>
// kernel: gcn_net_forward.1
= control target key start
LH: loop header
LB: loop body
LE: loop exit
PB: predicated region body
PF: predicated region fallthrough
CT: control target
= control target key end

     0   :  { %s765_s0 = inlined_call_operand.vmem [shape: s32[16,1], index: 0, kind: input, shape index: {}]   ;;  %s766_s1 = inlined_call_operand.vmem [shape: f32[28,32], index: 1, kind: input, shape index: {}]   ;;  %s767_s2 = inlined_call_operand.vmem [shape: f32[16,16], index: 2, kind: input, shape index: {}]   ;;  %s768_s3 = inlined_call_operand.hbm [shape: f32[4,32,32], index: 3, kind: input, shape index: {}]   ;;  %s769_s4 = inlined_call_operand.vmem [shape: f32[4,1,32], index: 4, kind: input, shape index: {}]   ;;  %s770_s5 = inlined_call_operand.vmem [shape: f32[32,16], index: 5, kind: input, shape index: {}]   ;;  %s771_s6 = inlined_call_operand.vmem [shape: f32[1,16], index: 6, kind: input, shape index: {}]   ;;  %s772_s7 = inlined_call_operand.vmem [shape: f32[16,8], index: 7, kind: input, shape index: {}]   ;;  %s773_s8 = inlined_call_operand.vmem [shape: f32[1,8], index: 8, kind: input, shape index: {}]   ;;  %s774_s9 = inlined_call_operand.vmem [shape: f32[8,1], index: 9, kind: input, shape index: {}]   ;;  %s775_s10 = inlined_call_operand.<no memory space> [shape: f32[1,1], index: 10, kind: input, shape index: {}]   ;;  %s776_s11 = inlined_call_operand.hbm [shape: f32[1,1], index: 11, kind: output, shape index: {}]  }
   0x1   :  { %v16_v0 = vstv %s775_s10 }
   0x2   :  { %17 = vst [vmem:[#allocation2] sm:$0x1] %v16_v0 }
   0x3   :  { %18 = vsyncpa [#allocation4], 0 }
   0x4   :  { %19 = vsyncpa [#allocation5], 0  ;;  %s30_s21 = sshll.u32 %s768_s3, 4  ;;  %s594_s22 = smov [#allocation3]   ;;  %s31_s21 = int_to_ptr.hbm [resolvable:$true] %s30_s21 }
   0x5   :  { %s32_s23 = sshll.u32 %s594_s22, 4  ;;  %s595_s24 = smov 128   ;;  %s33_s23 = int_to_ptr.vmem [resolvable:$true] %s32_s23 }
   0x6   :  { %s596_s25 = smov 8  }
   0x7   :  { %38 = dma.hbm_to_vmem [thread:$0]  %s31_s21, 2048, %s33_s23, [#allocation4], %s595_s24, %s595_s24, %s596_s25  }
   0x8   :  { %590 = dma.done.wait [#allocation4], 2048  }
   0x9   :  { %591 = vsyncadd [#allocation4], 4294965248  ;;  %v597_v1 = vmov 0   ;;  %vm84_vm0 = vcmask 1043456   ;;  %v57_v2 = vld [vmem:[%s765_s0] sm:$0xff]  ;;  %v75_v4 = vld [vmem:[%s766_s1 + $0x10] sm:$0xff]  ;;  %v59_v11 = vlaneseq }
   0xa   :  { %535 = vset.pattern.permute.xlu0 %v597_v1  ;;  %v76_v3 = vld [vmem:[%s766_s1 + $0x18] sm:$0xf]  ;;  %v74_v5 = vld [vmem:[%s766_s1 + $0x8] sm:$0xff]  ;;  %v73_v7 = vld [vmem:[%s766_s1] sm:$0xff]  ;;  %vm77_vm1 = vcmask 228352   ;;  %v598_v14 = vmov 0.0  }
   0xb   :  { %62 = vperm.xlu0 %535, %v57_v2   ;;  %503 = vmatpush.msk.msra.mxu0 %vm84_vm0, %v76_v3  ;;  %v58_v6 = vld [vmem:[%s765_s0 + $0x8] sm:$0xff]  ;;  %v116_v8 = vld [vmem:[#allocation3 + $0x18] sm:$0xff]  ;;  %v115_v9 = vld [vmem:[#allocation3 + $0x10] sm:$0xff]  ;;  %v60_v12 = vand.u32 127, %v59_v11  ;;  %vm117_vm4 = vcmask 261120   ;;  %vm151_vm5 = vcmask 130048  }
   0xc   :  { %136 = vmatpush.msra.mxu1 %v116_v8  ;;  %v114_v10 = vld [vmem:[#allocation3 + $0x8] sm:$0xff]  ;;  %v113_v18 = vld [vmem:[#allocation3] sm:$0xff]  ;;  %v189_v25 = vld [vmem:[#allocation3 + $0x38] sm:$0xff]  ;;  %vm458_vm7 = vcmask 64512   ;;  %vm482_vm8 = vcmask 0  }
   0xd   :  { %101 = vmatpush.msra.mxu0 %v75_v4  ;;  %v690_v23 = vld [vmem:[%s767_s2] sm:$0xff]  ;;  %v697_v24 = vld [vmem:[%s767_s2 + $0x8] sm:$0xff]  ;;  %208 = vmatpush.msra.mxu3 %v189_v25  ;;  %v188_v26 = vld [vmem:[#allocation3 + $0x30] sm:$0xff]  ;;  %s491_s2 = sshll.u32 %s776_s11, 4  ;;  %s492_s2 = int_to_ptr.hbm [resolvable:$true] %s491_s2 }
   0xe   :  { %137 = vmatpush.msra.mxu1 %v115_v9  ;;  %v187_v27 = vld [vmem:[#allocation3 + $0x28] sm:$0xff]  ;;  %v186_v28 = vld [vmem:[#allocation3 + $0x20] sm:$0xff]  ;;  %v536_v29 = vld [vmem:[%s769_s4] ss:$0 sm:$0xff] }
   0xf   :  { %102 = vmatpush.msra.mxu0 %v74_v5  ;;  %209 = vmatpush.msra.mxu3 %v188_v26  ;;  %v255_v40 = vld [vmem:[#allocation3 + $0x58] sm:$0xff]  ;;  %v254_v41 = vld [vmem:[#allocation3 + $0x50] sm:$0xff]  ;;  %v253_v42 = vld [vmem:[#allocation3 + $0x48] sm:$0xff] }
  0x10   :  { %138 = vmatpush.msra.mxu1 %v114_v10  ;;  %v252_v43 = vld [vmem:[#allocation3 + $0x40] sm:$0xff]  ;;  %v321_v55 = vld [vmem:[#allocation3 + $0x78] sm:$0xff]  ;;  %v320_v56 = vld [vmem:[#allocation3 + $0x70] sm:$0xff] }
  0x11   :  { %103 = vmatpush.msra.mxu0 %v73_v7  ;;  %210 = vmatpush.msra.mxu3 %v187_v27  ;;  %v537_v44 = vld [vmem:[%s769_s4 + $0x1] ss:$0 sm:$0xff]  ;;  %v319_v57 = vld [vmem:[#allocation3 + $0x68] sm:$0xff]  ;;  %v538_v59 = vld [vmem:[%s769_s4 + $0x2] ss:$0 sm:$0xff] }
  0x12   :  { %139 = vmatpush.msra.mxu1 %v113_v18  ;;  %v318_v58 = vld [vmem:[#allocation3 + $0x60] sm:$0xff]  ;;  %v402_v7 = vld [vmem:[%s770_s5 + $0x10] sm:$0xff] }
  0x13   :  { %65 = vperm.xlu0 %535, %v58_v6   ;;  %211 = vmatpush.msra.mxu3 %v186_v28  ;;  %v403_v6 = vld [vmem:[%s770_s5 + $0x18] sm:$0xff]  ;;  %v401_v8 = vld [vmem:[%s770_s5 + $0x8] sm:$0xff]  ;;  %v400_v9 = vld [vmem:[%s770_s5] sm:$0xff] }
  0x14   :  { %274 = vmatpush.msrb.mxu0 %v255_v40  ;;  %v539_v10 = vld [vmem:[%s769_s4 + $0x3] ss:$0 sm:$0xff] }
  0x15   :  { %340 = vmatpush.msrb.mxu3 %v321_v55 }
  0x16   :  { %275 = vmatpush.msrb.mxu0 %v254_v41 }
  0x17   :  { %341 = vmatpush.msrb.mxu3 %v320_v56 }
  0x18   :  { %276 = vmatpush.msrb.mxu0 %v253_v42  ;;  %v456_v42 = vld [vmem:[%s774_s9] sm:$0xff] }
  0x19   :  { %342 = vmatpush.msrb.mxu3 %v319_v57 }
  0x1a   :  { %277 = vmatpush.msrb.mxu0 %v252_v43  ;;  %v431_v43 = vld [vmem:[%s773_s8] sm:$0x1] }
  0x1b   :  { %343 = vmatpush.msrb.mxu3 %v318_v58 }
  0x7d   :  { %v63_v13 = vpop.permute.xlu0 %62 }
  0x7e   :  { %vm67_vm2 = vcmp.eq.s32.totalorder %v60_v12, %v63_v13 }
  0x7f   :  { %v501_v15 = vsel %vm67_vm2, 1.0, %v598_v14 }
  0x80   :  { %504 = vmatmul.msk.f32.vlgmr.msra.gmra.mxu0 %vm77_vm1, %v501_v15 }
  0x81   :  { %420 = vmatpush.msra.mxu0 %v403_v6 }
  0x83   :  { %421 = vmatpush.msra.mxu0 %v402_v7 }
  0x85   :  { %v66_v16 = vpop.permute.xlu0 %65  ;;  %422 = vmatpush.msra.mxu0 %v401_v8 }
  0x86   :  { %vm68_vm3 = vcmp.eq.s32.totalorder %v60_v12, %v66_v16  ;;  %v599_v12 = vmov 16.0  }
  0x87   :  { %v502_v17 = vsel %vm68_vm3, 1.0, %v598_v14  ;;  %423 = vmatpush.msra.mxu0 %v400_v9  ;;  %540 = vrcp.f32 %v599_v12 }
  0x88   :  { %505 = vmatmul.msk.f32.gmra.mxu0 %vm77_vm1, %v502_v17 }
  0x8d   :  { %v541_v15 = vpop.eup %540 }
  0x8e   :  { %vm397_vm6 = vweird.f32 %v541_v15 }
  0xfd   :  { %v105_v19 = vpop.f32.mrf.mxu0 }
  0xfe   :  { %506 = vmatmul.msk.f32.vlgmr.msra.gmra.mxu1 %vm117_vm4, %v105_v19 }
 0x105   :  { %v108_v20 = vpop.f32.mrf.mxu0 }
 0x106   :  { %507 = vmatmul.msk.f32.gmra.mxu1 %vm117_vm4, %v108_v20 }
 0x17b   :  { %v141_v21 = vpop.f32.mrf.mxu1 }
 0x183   :  { %v144_v22 = vpop.f32.mrf.mxu1 }
 0x184   :  { %172 = vmatpush.msra.mxu2 %v144_v22 }
 0x186   :  { %173 = vmatpush.msra.mxu2 %v141_v21 }
 0x187   :  { %508 = vmatmul.msk.f32.vlgmr.msra.gmra.mxu2 %vm151_vm5, %v690_v23 }
 0x18f   :  { %509 = vmatmul.msk.f32.gmra.mxu2 %vm151_vm5, %v697_v24 }
 0x20a   :  { %v175_v30 = vpop.f32.mrf.mxu2 }
 0x20b   :  { %v176_v31 = vadd.f32 %v536_v29, %v175_v30 }
 0x20d   :  { %v181_v32 = vmax.f32 %v176_v31, 0.0 }
 0x20f   :  { %v183_v33 = vadd.f32 %v181_v32, %v105_v19 }
 0x211   :  { %510 = vmatmul.msk.f32.vlgmr.msra.gmra.mxu3 %vm117_vm4, %v183_v33 }
 0x212   :  { %v178_v34 = vpop.f32.mrf.mxu2  ;;  %477 = vmatpush.msra.mxu3 %v456_v42 }
 0x213   :  { %v179_v35 = vadd.f32 %v536_v29, %v178_v34 }
 0x215   :  { %v182_v36 = vmax.f32 %v179_v35, 0.0 }
 0x217   :  { %v184_v37 = vadd.f32 %v182_v36, %v108_v20  ;;  %v393_v20 = vmul.f32 16.0, %v541_v15  ;;  %v430_v36 = vld [vmem:[%s772_s7 + $0x8] sm:$0xff] }
 0x219   :  { %511 = vmatmul.msk.f32.gmra.mxu3 %vm117_vm4, %v184_v37 }
 0x294   :  { %v213_v38 = vpop.f32.mrf.mxu3 }
 0x29c   :  { %v216_v39 = vpop.f32.mrf.mxu3 }
 0x29d   :  { %238 = vmatpush.msrb.mxu2 %v216_v39 }
 0x29f   :  { %239 = vmatpush.msrb.mxu2 %v213_v38  ;;  %v404_v38 = vld [vmem:[%s771_s6] sm:$0x1]  ;;  %s600_s6 = smov [#allocation6]  }
 0x2a0   :  { %513 = vmatmul.msk.f32.vlgmr.msrb.gmra.mxu2 %vm151_vm5, %v690_v23 }
 0x2a8   :  { %514 = vmatmul.msk.f32.gmra.mxu2 %vm151_vm5, %v697_v24 }
 0x323   :  { %v241_v45 = vpop.f32.mrf.mxu2 }
 0x324   :  { %v242_v46 = vadd.f32 %v537_v44, %v241_v45 }
 0x326   :  { %v247_v47 = vmax.f32 %v242_v46, 0.0 }
 0x328   :  { %v249_v48 = vadd.f32 %v247_v47, %v183_v33  ;;  %v457_v47 = vld [vmem:[#allocation2] sm:$0x1] }
 0x32a   :  { %515 = vmatmul.msk.f32.vlgmr.msrb.gmra.mxu0 %vm117_vm4, %v249_v48 }
 0x32b   :  { %v244_v49 = vpop.f32.mrf.mxu2 }
 0x32c   :  { %v245_v50 = vadd.f32 %v537_v44, %v244_v49 }
 0x32e   :  { %v248_v51 = vmax.f32 %v245_v50, 0.0 }
 0x330   :  { %v250_v52 = vadd.f32 %v248_v51, %v184_v37  ;;  %v429_v37 = vld [vmem:[%s772_s7] sm:$0xff]  ;;  %s489_s7 = sshll.u32 %s600_s6, 4  ;;  %s490_s7 = int_to_ptr.vmem [resolvable:$true] %s489_s7 }
 0x332   :  { %516 = vmatmul.msk.f32.gmra.mxu0 %vm117_vm4, %v250_v52 }
 0x3a7   :  { %v279_v53 = vpop.f32.mrf.mxu0 }
 0x3af   :  { %v282_v54 = vpop.f32.mrf.mxu0 }
 0x3b0   :  { %304 = vmatpush.msrb.mxu1 %v282_v54 }
 0x3b2   :  { %305 = vmatpush.msrb.mxu1 %v279_v53 }
 0x3b3   :  { %518 = vmatmul.msk.f32.vlgmr.msrb.gmra.mxu1 %vm151_vm5, %v690_v23 }
 0x3b4   :  { %449 = vmatpush.msra.mxu1 %v430_v36 }
 0x3b6   :  { %450 = vmatpush.msra.mxu1 %v429_v37 }
 0x3bb   :  { %519 = vmatmul.msk.f32.gmra.mxu1 %vm151_vm5, %v697_v24 }
 0x430   :  { %v307_v60 = vpop.f32.mrf.mxu1 }
 0x431   :  { %v308_v61 = vadd.f32 %v538_v59, %v307_v60 }
 0x433   :  { %v313_v62 = vmax.f32 %v308_v61, 0.0 }
 0x435   :  { %v315_v63 = vadd.f32 %v313_v62, %v249_v48 }
 0x437   :  { %520 = vmatmul.msk.f32.vlgmr.msrb.gmra.mxu3 %vm117_vm4, %v315_v63 }
 0x438   :  { %v310_v0 = vpop.f32.mrf.mxu1 }
 0x439   :  { %v311_v1 = vadd.f32 %v538_v59, %v310_v0 }
 0x43b   :  { %v314_v2 = vmax.f32 %v311_v1, 0.0 }
 0x43d   :  { %v316_v3 = vadd.f32 %v314_v2, %v250_v52 }
 0x43f   :  { %521 = vmatmul.msk.f32.gmra.mxu3 %vm117_vm4, %v316_v3 }
 0x4ba   :  { %v345_v4 = vpop.f32.mrf.mxu3 }
 0x4c2   :  { %v348_v5 = vpop.f32.mrf.mxu3 }
 0x4c3   :  { %370 = vmatpush.msra.mxu2 %v348_v5 }
 0x4c5   :  { %371 = vmatpush.msra.mxu2 %v345_v4 }
 0x4c6   :  { %523 = vmatmul.msk.f32.vlgmr.msra.gmra.mxu2 %vm151_vm5, %v690_v23 }
 0x4ce   :  { %524 = vmatmul.msk.f32.gmra.mxu2 %vm151_vm5, %v697_v24  ;;  %v394_v24 = vsub.f32 1.0, %v393_v20 }
 0x4d0   :  { %v395_v27 = vmul.f32 %v541_v15, %v394_v24 }
 0x4d2   :  { %v396_v30 = vadd.f32 %v541_v15, %v395_v27 }
 0x4d4   :  { %v398_v33 = vsel %vm397_vm6, %v541_v15, %v396_v30 }
 0x549   :  { %v373_v11 = vpop.f32.mrf.mxu2 }
 0x54a   :  { %v374_v13 = vadd.f32 %v539_v10, %v373_v11 }
 0x54c   :  { %v379_v14 = vmax.f32 %v374_v13, 0.0 }
 0x54e   :  { %v381_v18 = vadd.f32 %v379_v14, %v315_v63 }
 0x550   :  { %v383_v22 = vsel %vm117_vm4, %v381_v18, 0.0 }
 0x551   :  { %v376_v16 = vpop.f32.mrf.mxu2 }
 0x552   :  { %v377_v17 = vadd.f32 %v539_v10, %v376_v16 }
 0x554   :  { %v380_v19 = vmax.f32 %v377_v17, 0.0 }
 0x556   :  { %v382_v21 = vadd.f32 %v380_v19, %v316_v3 }
 0x558   :  { %v384_v23 = vsel %vm117_vm4, %v382_v21, 0.0 }
 0x559   :  { %v385_v25 = vadd.f32 %v384_v23, %v383_v22 }
 0x55b   :  { %v386_v26 = vrot.slane %v385_v25, 4 }
 0x55d   :  { %v387_v28 = vadd.f32 %v386_v26, %v385_v25 }
 0x55f   :  { %v388_v29 = vrot.slane %v387_v28, 2 }
 0x561   :  { %v389_v31 = vadd.f32 %v388_v29, %v387_v28 }
 0x563   :  { %v390_v32 = vrot.slane %v389_v31, 1 }
 0x565   :  { %v391_v34 = vadd.f32 %v390_v32, %v389_v31 }
 0x567   :  { %v399_v35 = vmul.f32 %v398_v33, %v391_v34 }
 0x569   :  { %525 = vmatmul.msk.f32.vlgmr.msra.gmra.mxu0 %vm117_vm4, %v399_v35 }
 0x5e6   :  { %v425_v39 = vpop.f32.mrf.mxu0 }
 0x5e7   :  { %v426_v40 = vadd.f32 %v425_v39, %v404_v38 }
 0x5e9   :  { %v428_v41 = vmax.f32 %v426_v40, 0.0 }
 0x5eb   :  { %526 = vmatmul.msk.f32.vlgmr.msra.gmra.mxu1 %vm151_vm5, %v428_v41 }
 0x668   :  { %v452_v44 = vpop.f32.mrf.mxu1 }
 0x669   :  { %v453_v45 = vadd.f32 %v452_v44, %v431_v43 }
 0x66b   :  { %v455_v46 = vmax.f32 %v453_v45, 0.0 }
 0x66d   :  { %527 = vmatmul.msk.f32.vlgmr.msra.gmra.mxu3 %vm458_vm7, %v455_v46 }
 0x6f0   :  { %v479_v48 = vpop.f32.mrf.mxu3 }
 0x6f1   :  { %v480_v49 = vadd.f32 %v479_v48, %v457_v47 }
 0x6f3   :  { %483 = vst.msk [vmem:[#allocation6] sm:$0x1] %vm482_vm8, %v480_v49 }
 0x6f4   :  { %494 = dma.vmem_to_hbm [thread:$0]  %s490_s7, 16, %s492_s2, [#allocation5]  }
 0x6f5   :  { %592 = dma.done.wait [#allocation5], 16  }
 0x6f6   :  { %593 = vsyncadd [#allocation5], 4294967280 }
 0x6f7   :  { %499 = vsyncpa [#allocation4], 1 }
 0x6f8   :  { %500 = vsyncpa [#allocation5], 1 }

</bundles_post_ra>
